<compile_context>
chip_gen: v5e
topology: v5e:2x2
jax: 0.10.0
libtpu: 0.0.40
codegen_flags: <defaults>
</compile_context>

<pallas_src>
import functools

import jax
import jax.numpy as jnp
from jax.experimental import pallas as pl
from jax.experimental.pallas import tpu as pltpu


_LANE = 128          # lane width
_SUBLANE = 8         # f32 sublane granularity
_BF16_PACK = 16      # bf16 sublane packing (contraction-dim granularity)
_MAX_ROW_TILE = 512  # batch rows per grid step (large => amortize grid overhead)


def _round_up(x, m):
    return ((x + m - 1) // m) * m


# ----------------------------------------------------------------------------
# Pallas kernel: fully fused (Linear -> optional ReLU) x N for one batch tile
# ----------------------------------------------------------------------------
def _fused_mlp_kernel(x_ref, w_ref, b_ref, o_ref, *, relu_flags):
    """x_ref: (rows, in_f) bf16 activations for this batch tile.
    w_ref: (L, K, N) bf16 weights, pre-transposed (in, out), zero padded.
    b_ref: (L, 1, N) bf16 biases, zero padded.
    o_ref: (rows, N) f32 output tile (lane-dense, N = 128-multiple).
    """
    num_layers = len(relu_flags)
    k_dim = w_ref.shape[1]

    h = x_ref[...]                                    # bf16 (rows, in_f)
    for li, relu in enumerate(relu_flags):            # static Python unroll
        lhs = h
        if lhs.shape[1] > k_dim:
            lhs = lhs[:, :k_dim]                      # padded lanes beyond K are zero
        elif lhs.shape[1] < k_dim:
            lhs = jnp.pad(lhs, ((0, 0), (0, k_dim - lhs.shape[1])))
        w = w_ref[li]                                 # (K, N) bf16, resident in VMEM
        b = b_ref[li].astype(jnp.float32)             # (1, N) upcast once per layer
        acc = jnp.dot(lhs, w, preferred_element_type=jnp.float32) + b
        if relu:
            acc = jnp.maximum(acc, 0.0)
        # Feed the next MXU pass in bf16; keep the final layer's result in f32.
        h = acc.astype(jnp.bfloat16) if li + 1 < num_layers else acc
    o_ref[...] = h.astype(o_ref.dtype)


def fused_mlp_pallas(x, w_all, b_all, relu_flags, row_tile):
    """Run the whole fused Linear/ReLU chain over a batch-tiled grid.

    x      : (rows, in_f) bf16, rows a multiple of row_tile
    w_all  : (L, K, N) bf16 packed weight slab
    b_all  : (L, 1, N) bf16 packed bias slab
    """
    rows, in_f = x.shape
    num_layers, k_dim, n_dim = w_all.shape
    grid = (rows // row_tile,)

    kernel = functools.partial(_fused_mlp_kernel, relu_flags=tuple(relu_flags))

    return pl.pallas_call(
        kernel,
        out_shape=jax.ShapeDtypeStruct((rows, n_dim), jnp.float32),
        grid_spec=pltpu.PrefetchScalarGridSpec(
            num_scalar_prefetch=0,
            grid=grid,
            in_specs=[
                # Batch-tiled activations (last dim equals full array dim).
                pl.BlockSpec((row_tile, in_f), lambda i: (i, 0)),
                # Weight / bias slabs: constant index_map -> resident, never re-fetched.
                pl.BlockSpec((num_layers, k_dim, n_dim), lambda i: (0, 0, 0)),
                pl.BlockSpec((num_layers, 1, n_dim), lambda i: (0, 0, 0)),
            ],
            out_specs=pl.BlockSpec((row_tile, n_dim), lambda i: (i, 0)),
        ),
        compiler_params=pltpu.CompilerParams(
            dimension_semantics=("parallel",)),
    )(x, w_all, b_all)


# ----------------------------------------------------------------------------
# EnDeCoder: config parsing + fused Sequential forward
# ----------------------------------------------------------------------------
class EnDeCoder:
    """JAX/Pallas port of the config-driven Sequential EnDeCoder."""

    def __init__(self, config, key):
        # Raw (torch-layout, f32) params, for the pure-JAX semantic reference.
        self.layers = self.parse_model(config, key)
        # Packed bf16 slabs for the fused Pallas kernel.
        (self.w_all, self.b_all, self.relu_flags,
         self.in_features, self.out_features) = self._pack_params(self.layers)

    @staticmethod
    def parse_model(config, key):
        """Parse module list from config -> list of (kind, params)."""
        layers = []
        for element in config:
            module_name, params = element[0], element[1:]
            if module_name == "Linear":
                in_f, out_f = params
                key, wk, bk = jax.random.split(key, 3)
                bound = 1.0 / float(in_f) ** 0.5
                w = jax.random.uniform(wk, (out_f, in_f), jnp.float32, -bound, bound)
                b = jax.random.uniform(bk, (out_f,), jnp.float32, -bound, bound)
                layers.append(("Linear", (w, b)))
            elif module_name == "ReLU":
                layers.append(("ReLU", ()))
            else:
                # TODO(synk): other base_module layer types from the original
                # config (e.g. Dropout/BatchNorm) not instantiated here.
                raise ValueError(f"Unsupported module: {module_name}")
        return layers

    @staticmethod
    def _pack_params(layers):
        """Group Linear(+ReLU); pad, pre-transpose and pack params into slabs."""
        stages = []
        in_features = None
        out_features = None
        i, n = 0, len(layers)
        while i < n:
            kind, params = layers[i]
            if kind != "Linear":
                # TODO(synk): standalone ReLU not preceded by Linear is not
                # expected in the AutoEncoder-v1 configs; not fused here.
                raise ValueError("Config must be a Linear(->ReLU?) chain.")
            w, b = params                      # torch layout (out, in)
            out_f, in_f = w.shape
            if in_features is None:
                in_features = in_f
            out_features = out_f
            fuse_relu = (i + 1 < n) and (layers[i + 1][0] == "ReLU")
            stages.append((w, b, fuse_relu))
            i += 2 if fuse_relu else 1

        num_layers = len(stages)
        # Contraction dim trimmed to the largest bf16-packed in_f (not 128).
        k_dim = max(_round_up(w.shape[1], _BF16_PACK) for w, _, _ in stages)
        n_dim = max(_round_up(w.shape[0], _LANE) for w, _, _ in stages)

        w_all = jnp.zeros((num_layers, k_dim, n_dim), jnp.bfloat16)
        b_all = jnp.zeros((num_layers, 1, n_dim), jnp.bfloat16)
        relu_flags = []
        for li, (w, b, relu) in enumerate(stages):
            out_f, in_f = w.shape
            w_all = w_all.at[li, :in_f, :out_f].set(
                jnp.transpose(w).astype(jnp.bfloat16))      # (in, out), no in-kernel .T
            b_all = b_all.at[li, 0, :out_f].set(b.astype(jnp.bfloat16))
            relu_flags.append(relu)
        return w_all, b_all, tuple(relu_flags), in_features, out_features

    def forward(self, inputs):
        """Sequential forward: one fused Pallas kernel for the whole stack."""
        batch, in_f = inputs.shape
        assert in_f == self.in_features

        x = inputs.astype(jnp.bfloat16)
        batch_pad = _round_up(batch, _SUBLANE)
        row_tile = batch_pad if batch_pad <= _MAX_ROW_TILE else _MAX_ROW_TILE
        padded_rows = _round_up(batch_pad, row_tile)
        if padded_rows != batch:
            x = jnp.pad(x, ((0, padded_rows - batch), (0, 0)))

        y = fused_mlp_pallas(x, self.w_all, self.b_all, self.relu_flags, row_tile)
        return y[:batch, : self.out_features].astype(inputs.dtype)

    __call__ = forward


# ----------------------------------------------------------------------------
# References (pure JAX) for correctness checks
# ----------------------------------------------------------------------------
def reference_forward(model, x):
    """Mirror of the kernel math: bf16 params/activations, f32 accumulation."""
    h = x.astype(jnp.bfloat16)
    num_layers, k_dim, _ = model.w_all.shape
    for li in range(num_layers):
        lhs = h
        if lhs.shape[1] > k_dim:
            lhs = lhs[:, :k_dim]
        elif lhs.shape[1] < k_dim:
            lhs = jnp.pad(lhs, ((0, 0), (0, k_dim - lhs.shape[1])))
        acc = jnp.dot(lhs, model.w_all[li], preferred_element_type=jnp.float32)
        acc = acc + model.b_all[li].astype(jnp.float32)
        if model.relu_flags[li]:
            acc = jnp.maximum(acc, 0.0)
        h = acc.astype(jnp.bfloat16) if li + 1 < num_layers else acc
    return h[:, : model.out_features]


def reference_forward_f32(model, x):
    """Unpadded full-precision torch-layout reference (semantic sanity)."""
    for kind, params in model.layers:
        if kind == "Linear":
            w, b = params
            x = x @ w.T + b
        else:  # ReLU
            x = jnp.maximum(x, 0.0)
    return x


if __name__ == "__main__":
    key = jax.random.PRNGKey(0)
    k_in, k_params = jax.random.split(key)

    # Synthetic AutoEncoder-v1 encoder/decoder config (module_name, *params)
    config = [
        ("Linear", 64, 32), ("ReLU",),
        ("Linear", 32, 16), ("ReLU",),
        ("Linear", 16, 32), ("ReLU",),
        ("Linear", 32, 64),
    ]

    model = EnDeCoder(config, k_params)

    # Input: flattened pose keypoints, (batch, features)
    x = jax.random.normal(k_in, (8, 64), dtype=jnp.float32)

    out = jax.block_until_ready(model(x))
    assert out.shape == (8, 64)

    # Tight check against the bf16-matched reference (same math as kernel).
    ref = reference_forward(model, x)
    assert jnp.allclose(out, ref, atol=1e-2, rtol=1e-2), (
        "max abs diff vs matched ref:",
        float(jnp.max(jnp.abs(out - ref))),
    )
    # Loose check against the unpadded f32 reference (bf16 quantization error).
    ref32 = reference_forward_f32(model, x)
    assert jnp.allclose(out, ref32, atol=1e-1, rtol=1e-1), (
        "max abs diff vs f32 ref:",
        float(jnp.max(jnp.abs(out - ref32))),
    )

    print("KERNEL_OK")
</pallas_src>

<mosaic_0001>
module attributes {stable_mosaic.version = 11 : i64} {
  func.func @_fused_mlp_kernel(%arg0: i32, %arg1: memref<8x64xbf16, #tpu.memory_space<vmem>>, %arg2: memref<4x64x128xbf16, #tpu.memory_space<vmem>>, %arg3: memref<4x1x128xbf16, #tpu.memory_space<vmem>>, %arg4: memref<8x128xf32, #tpu.memory_space<vmem>>) attributes {dimension_semantics = [#tpu.dimension_semantics<parallel>], iteration_bounds = array<i64: 1>, scalar_prefetch = 0 : i64, scratch_operands = 0 : i64, tpu.core_type = #tpu.core_type<tc>, window_params = [{transform_indices = @transform_0, window_bounds = array<i64: 8, 64>}, {pipeline_mode = #tpu.pipeline_mode<synchronous>, transform_indices = @transform_1, window_bounds = array<i64: 4, 64, 128>}, {pipeline_mode = #tpu.pipeline_mode<synchronous>, transform_indices = @transform_2, window_bounds = array<i64: 4, 1, 128>}, {transform_indices = @transform_3, window_bounds = array<i64: 8, 128>}]} {
    %c0 = arith.constant 0 : index
    %c0_0 = arith.constant 0 : index
    %0 = vector.load %arg1[%c0, %c0_0] : memref<8x64xbf16, #tpu.memory_space<vmem>>, vector<8x64xbf16>
    %c0_1 = arith.constant 0 : index
    %c0_2 = arith.constant 0 : index
    %c0_3 = arith.constant 0 : index
    %1 = vector.load %arg2[%c0_1, %c0_2, %c0_3] : memref<4x64x128xbf16, #tpu.memory_space<vmem>>, vector<1x64x128xbf16>
    %2 = vector.shape_cast %1 : vector<1x64x128xbf16> to vector<64x128xbf16>
    %c0_4 = arith.constant 0 : index
    %c0_5 = arith.constant 0 : index
    %c0_6 = arith.constant 0 : index
    %3 = vector.load %arg3[%c0_4, %c0_5, %c0_6] : memref<4x1x128xbf16, #tpu.memory_space<vmem>>, vector<1x1x128xbf16>
    %4 = vector.shape_cast %3 : vector<1x1x128xbf16> to vector<1x128xbf16>
    %5 = arith.extf %4 : vector<1x128xbf16> to vector<1x128xf32>
    %cst = arith.constant dense<0.000000e+00> : vector<8x128xf32>
    %6 = tpu.matmul %0, %2, %cst {dimension_numbers = #tpu.dot_dimension_numbers<[1], [0], [0], [1], [0, 0, 1, 1], [], []>} : vector<8x64xbf16>, vector<64x128xbf16>, vector<8x128xf32> -> vector<8x128xf32>
    %7 = vector.broadcast %5 : vector<1x128xf32> to vector<8x128xf32>
    %8 = arith.addf %6, %7 : vector<8x128xf32>
    %cst_7 = arith.constant 0.000000e+00 : f32
    %9 = vector.broadcast %cst_7 : f32 to vector<8x128xf32>
    %10 = arith.maximumf %8, %9 : vector<8x128xf32>
    %11 = arith.truncf %10 : vector<8x128xf32> to vector<8x128xbf16>
    %12 = vector.extract_strided_slice %11 {offsets = [0, 0], sizes = [8, 64], strides = [1, 1]} : vector<8x128xbf16> to vector<8x64xbf16>
    %c1 = arith.constant 1 : index
    %c0_8 = arith.constant 0 : index
    %c0_9 = arith.constant 0 : index
    %13 = vector.load %arg2[%c1, %c0_8, %c0_9] : memref<4x64x128xbf16, #tpu.memory_space<vmem>>, vector<1x64x128xbf16>
    %14 = vector.shape_cast %13 : vector<1x64x128xbf16> to vector<64x128xbf16>
    %c1_10 = arith.constant 1 : index
    %c0_11 = arith.constant 0 : index
    %c0_12 = arith.constant 0 : index
    %15 = vector.load %arg3[%c1_10, %c0_11, %c0_12] : memref<4x1x128xbf16, #tpu.memory_space<vmem>>, vector<1x1x128xbf16>
    %16 = vector.shape_cast %15 : vector<1x1x128xbf16> to vector<1x128xbf16>
    %17 = arith.extf %16 : vector<1x128xbf16> to vector<1x128xf32>
    %cst_13 = arith.constant dense<0.000000e+00> : vector<8x128xf32>
    %18 = tpu.matmul %12, %14, %cst_13 {dimension_numbers = #tpu.dot_dimension_numbers<[1], [0], [0], [1], [0, 0, 1, 1], [], []>} : vector<8x64xbf16>, vector<64x128xbf16>, vector<8x128xf32> -> vector<8x128xf32>
    %19 = vector.broadcast %17 : vector<1x128xf32> to vector<8x128xf32>
    %20 = arith.addf %18, %19 : vector<8x128xf32>
    %cst_14 = arith.constant 0.000000e+00 : f32
    %21 = vector.broadcast %cst_14 : f32 to vector<8x128xf32>
    %22 = arith.maximumf %20, %21 : vector<8x128xf32>
    %23 = arith.truncf %22 : vector<8x128xf32> to vector<8x128xbf16>
    %24 = vector.extract_strided_slice %23 {offsets = [0, 0], sizes = [8, 64], strides = [1, 1]} : vector<8x128xbf16> to vector<8x64xbf16>
    %c2 = arith.constant 2 : index
    %c0_15 = arith.constant 0 : index
    %c0_16 = arith.constant 0 : index
    %25 = vector.load %arg2[%c2, %c0_15, %c0_16] : memref<4x64x128xbf16, #tpu.memory_space<vmem>>, vector<1x64x128xbf16>
    %26 = vector.shape_cast %25 : vector<1x64x128xbf16> to vector<64x128xbf16>
    %c2_17 = arith.constant 2 : index
    %c0_18 = arith.constant 0 : index
    %c0_19 = arith.constant 0 : index
    %27 = vector.load %arg3[%c2_17, %c0_18, %c0_19] : memref<4x1x128xbf16, #tpu.memory_space<vmem>>, vector<1x1x128xbf16>
    %28 = vector.shape_cast %27 : vector<1x1x128xbf16> to vector<1x128xbf16>
    %29 = arith.extf %28 : vector<1x128xbf16> to vector<1x128xf32>
    %cst_20 = arith.constant dense<0.000000e+00> : vector<8x128xf32>
    %30 = tpu.matmul %24, %26, %cst_20 {dimension_numbers = #tpu.dot_dimension_numbers<[1], [0], [0], [1], [0, 0, 1, 1], [], []>} : vector<8x64xbf16>, vector<64x128xbf16>, vector<8x128xf32> -> vector<8x128xf32>
    %31 = vector.broadcast %29 : vector<1x128xf32> to vector<8x128xf32>
    %32 = arith.addf %30, %31 : vector<8x128xf32>
    %cst_21 = arith.constant 0.000000e+00 : f32
    %33 = vector.broadcast %cst_21 : f32 to vector<8x128xf32>
    %34 = arith.maximumf %32, %33 : vector<8x128xf32>
    %35 = arith.truncf %34 : vector<8x128xf32> to vector<8x128xbf16>
    %36 = vector.extract_strided_slice %35 {offsets = [0, 0], sizes = [8, 64], strides = [1, 1]} : vector<8x128xbf16> to vector<8x64xbf16>
    %c3 = arith.constant 3 : index
    %c0_22 = arith.constant 0 : index
    %c0_23 = arith.constant 0 : index
    %37 = vector.load %arg2[%c3, %c0_22, %c0_23] : memref<4x64x128xbf16, #tpu.memory_space<vmem>>, vector<1x64x128xbf16>
    %38 = vector.shape_cast %37 : vector<1x64x128xbf16> to vector<64x128xbf16>
    %c3_24 = arith.constant 3 : index
    %c0_25 = arith.constant 0 : index
    %c0_26 = arith.constant 0 : index
    %39 = vector.load %arg3[%c3_24, %c0_25, %c0_26] : memref<4x1x128xbf16, #tpu.memory_space<vmem>>, vector<1x1x128xbf16>
    %40 = vector.shape_cast %39 : vector<1x1x128xbf16> to vector<1x128xbf16>
    %41 = arith.extf %40 : vector<1x128xbf16> to vector<1x128xf32>
    %cst_27 = arith.constant dense<0.000000e+00> : vector<8x128xf32>
    %42 = tpu.matmul %36, %38, %cst_27 {dimension_numbers = #tpu.dot_dimension_numbers<[1], [0], [0], [1], [0, 0, 1, 1], [], []>} : vector<8x64xbf16>, vector<64x128xbf16>, vector<8x128xf32> -> vector<8x128xf32>
    %43 = vector.broadcast %41 : vector<1x128xf32> to vector<8x128xf32>
    %44 = arith.addf %42, %43 : vector<8x128xf32>
    %c0_28 = arith.constant 0 : index
    %c0_29 = arith.constant 0 : index
    %45 = vector.load %arg4[%c0_28, %c0_29] : memref<8x128xf32, #tpu.memory_space<vmem>>, vector<8x128xf32>
    tpu.vector_store %arg4[%c0_28, %c0_29], %44 {strides = array<i32>} : memref<8x128xf32, #tpu.memory_space<vmem>>, vector<8x128xf32>,
    return
  }
  func.func @transform_0(%arg0: i32) -> (i32, i32) {
    %c0_i32 = arith.constant 0 : i32
    %c0_i32_0 = arith.constant 0 : i32
    return %arg0, %c0_i32 : i32, i32
  }
  func.func @transform_1(%arg0: i32) -> (i32, i32, i32) {
    %c0_i32 = arith.constant 0 : i32
    %c0_i32_0 = arith.constant 0 : i32
    %c0_i32_1 = arith.constant 0 : i32
    %c0_i32_2 = arith.constant 0 : i32
    return %c0_i32, %c0_i32_0, %c0_i32_1 : i32, i32, i32
  }
  func.func @transform_2(%arg0: i32) -> (i32, i32, i32) {
    %c0_i32 = arith.constant 0 : i32
    %c0_i32_0 = arith.constant 0 : i32
    %c0_i32_1 = arith.constant 0 : i32
    %c0_i32_2 = arith.constant 0 : i32
    return %c0_i32, %c0_i32_0, %c0_i32_1 : i32, i32, i32
  }
  func.func @transform_3(%arg0: i32) -> (i32, i32) {
    %c0_i32 = arith.constant 0 : i32
    %c0_i32_0 = arith.constant 0 : i32
    return %arg0, %c0_i32 : i32, i32
  }
}

</mosaic_0001>

<bundles_post_ra>
// kernel: tpu_custom_call.1
= control target key start
LH: loop header
LB: loop body
LE: loop exit
PB: predicated region body
PF: predicated region fallthrough
CT: control target
= control target key end

     0   :  { %8 = vsyncpa [#allocation3], 0  ;;  %s460_s0 = inlined_call_operand.vmem [shape: bf16[8,64], index: 0, kind: input, shape index: {}]   ;;  %s461_s1 = inlined_call_operand.hbm [shape: bf16[4,64,128], index: 1, kind: input, shape index: {}]   ;;  %s462_s2 = inlined_call_operand.vmem [shape: bf16[4,1,128], index: 2, kind: input, shape index: {}]   ;;  %s463_s3 = inlined_call_operand.hbm [shape: f32[8,128], index: 3, kind: output, shape index: {}]  }
   0x1   :  { %9 = vsyncpa [#allocation4], 0  ;;  %s16_s14 = sshll.u32 %s461_s1, 4  ;;  %s411_s15 = smov [#allocation2]   ;;  %s17_s14 = int_to_ptr.hbm [resolvable:$true] %s16_s14 }
   0x2   :  { %s18_s16 = sshll.u32 %s411_s15, 4  ;;  %s412_s17 = smov 64   ;;  %s19_s16 = int_to_ptr.vmem [resolvable:$true] %s18_s16 }
   0x3   :  { %s413_s18 = smov 4  }
   0x4   :  { %24 = dma.hbm_to_vmem [thread:$0]  %s17_s14, 2048, %s19_s16, [#allocation3], %s412_s17, %s412_s17, %s413_s18  }
   0x5   :  { %407 = dma.done.wait [#allocation3], 2048  }
   0x6   :  { %408 = vsyncadd [#allocation3], 4294965248  ;;  %v342_v0 = vld [vmem:[#allocation2 + $0x18] sm:$0xff]  ;;  %v341_v2 = vld [vmem:[#allocation2 + $0x10] sm:$0xff]  ;;  %vm68_vm0 = vcmask 523264   ;;  %s414_s27 = smov [#allocation5]  }
   0x7   :  { %v346_v1 = vld [vmem:[#allocation2 + $0x38] sm:$0xff]  ;;  %76 = vmatpush.bf16.msra.mxu0 %v342_v0  ;;  %v345_v3 = vld [vmem:[#allocation2 + $0x30] sm:$0xff]  ;;  %v340_v4 = vld [vmem:[#allocation2 + $0x8] sm:$0xff]  ;;  %s256_s28 = sshll.u32 %s414_s27, 4  ;;  %s258_s4 = sshll.u32 %s463_s3, 4  ;;  %s257_s28 = int_to_ptr.vmem [resolvable:$true] %s256_s28  ;;  %s259_s4 = int_to_ptr.hbm [resolvable:$true] %s258_s4 }
   0x8   :  { %131 = vmatpush.bf16.msra.mxu1 %v346_v1  ;;  %v339_v5 = vld [vmem:[#allocation2] sm:$0xff]  ;;  %v344_v7 = vld [vmem:[#allocation2 + $0x28] sm:$0xff]  ;;  %v350_v9 = vld [vmem:[#allocation2 + $0x58] sm:$0xff] }
   0x9   :  { %v32_v6 = vld [vmem:[%s460_s0] sm:$0xf]  ;;  %186 = vmatpush.bf16.msra.mxu2 %v350_v9  ;;  %v349_v10 = vld [vmem:[#allocation2 + $0x50] sm:$0xff]  ;;  %v348_v19 = vld [vmem:[#allocation2 + $0x48] sm:$0xff] }
   0xa   :  { %v343_v8 = vld [vmem:[#allocation2 + $0x20] sm:$0xff]  ;;  %v354_v21 = vld [vmem:[#allocation2 + $0x78] sm:$0xff]  ;;  %v353_v22 = vld [vmem:[#allocation2 + $0x70] sm:$0xff] }
   0xb   :  { %77 = vmatpush.bf16.msra.mxu0 %v341_v2  ;;  %v41_v11 = vld [vmem:[%s462_s2] sm:$0x1]  ;;  %241 = vmatpush.bf16.msra.mxu3 %v354_v21  ;;  %v285_v23 = vld [vmem:[%s462_s2 + $0x1] sm:$0x1]  ;;  %v352_v31 = vld [vmem:[#allocation2 + $0x68] sm:$0xff] }
   0xc   :  { %132 = vmatpush.bf16.msra.mxu1 %v345_v3  ;;  %v42_v12 = vunpack.c.l.bf16 %v41_v11  ;;  %v347_v20 = vld [vmem:[#allocation2 + $0x40] sm:$0xff]  ;;  %v98_v24 = vunpack.c.l.bf16 %v285_v23 }
   0xd   :  { %187 = vmatpush.bf16.msra.mxu2 %v349_v10  ;;  %v351_v32 = vld [vmem:[#allocation2 + $0x60] sm:$0xff] }
   0xe   :  { %v43_v13 = vperm.slane %v42_v12, 0  ;;  %v99_v25 = vperm.slane %v98_v24, 0  ;;  %v303_v33 = vld [vmem:[%s462_s2 + $0x2] sm:$0x1]  ;;  %v321_v41 = vld [vmem:[%s462_s2 + $0x3] sm:$0x1] }
   0xf   :  { %78 = vmatpush.bf16.msra.mxu0 %v340_v4  ;;  %242 = vmatpush.bf16.msra.mxu3 %v353_v22  ;;  %v153_v34 = vunpack.c.l.bf16 %v303_v33  ;;  %v208_v42 = vunpack.c.l.bf16 %v321_v41 }
  0x10   :  { %133 = vmatpush.bf16.msra.mxu1 %v344_v7 }
  0x11   :  { %188 = vmatpush.bf16.msra.mxu2 %v348_v19  ;;  %v154_v35 = vperm.slane %v153_v34, 0  ;;  %v209_v43 = vperm.slane %v208_v42, 0 }
  0x13   :  { %79 = vmatpush.bf16.msra.mxu0 %v339_v5  ;;  %243 = vmatpush.bf16.msra.mxu3 %v352_v31 }
  0x14   :  { %134 = vmatpush.bf16.msra.mxu1 %v343_v8 }
  0x15   :  { %189 = vmatpush.bf16.msra.mxu2 %v347_v20 }
  0x16   :  { %284 = vmatmul.msk.bf16.vlgmr.msra.gmra.mxu0 %vm68_vm0, %v32_v6 }
  0x17   :  { %244 = vmatpush.bf16.msra.mxu3 %v351_v32 }
  0x93   :  { %v81_v14 = vpop.f32.mrf.mxu0 }
  0x94   :  { %v82_v15 = vadd.f32 %v81_v14, %v43_v13 }
  0x96   :  { %v85_v16 = vmax.f32 %v82_v15, 0.0 }
  0x98   :  { %v86_v17 = vpack.c.bf16 %v85_v16, %v85_v16 }
  0x9a   :  { %302 = vmatmul.msk.bf16.vlgmr.msra.gmra.mxu1 %vm68_vm0, %v86_v17 }
  0x9b   :  { %v83_v18 = vpop.f32.mrf.mxu0 }
 0x117   :  { %v136_v26 = vpop.f32.mrf.mxu1 }
 0x118   :  { %v137_v27 = vadd.f32 %v136_v26, %v99_v25 }
 0x11a   :  { %v140_v28 = vmax.f32 %v137_v27, 0.0 }
 0x11c   :  { %v141_v29 = vpack.c.bf16 %v140_v28, %v140_v28 }
 0x11e   :  { %320 = vmatmul.msk.bf16.vlgmr.msra.gmra.mxu2 %vm68_vm0, %v141_v29 }
 0x11f   :  { %v138_v30 = vpop.f32.mrf.mxu1 }
 0x1a1   :  { %v191_v36 = vpop.f32.mrf.mxu2 }
 0x1a2   :  { %v192_v37 = vadd.f32 %v191_v36, %v154_v35 }
 0x1a4   :  { %v195_v38 = vmax.f32 %v192_v37, 0.0 }
 0x1a6   :  { %v196_v39 = vpack.c.bf16 %v195_v38, %v195_v38 }
 0x1a8   :  { %338 = vmatmul.msk.bf16.vlgmr.msra.gmra.mxu3 %vm68_vm0, %v196_v39 }
 0x1a9   :  { %v193_v40 = vpop.f32.mrf.mxu2 }
 0x22b   :  { %v246_v44 = vpop.f32.mrf.mxu3 }
 0x22c   :  { %v247_v45 = vadd.f32 %v246_v44, %v209_v43 }
 0x22e   :  { %250 = vst [vmem:[#allocation5] sm:$0xff] %v247_v45 }
 0x22f   :  { %261 = dma.vmem_to_hbm [thread:$0]  %s257_s28, 128, %s259_s4, [#allocation4]  }
 0x233   :  { %v248_v46 = vpop.f32.mrf.mxu3 }
 0x234   :  { %409 = dma.done.wait [#allocation4], 128  }
 0x235   :  { %410 = vsyncadd [#allocation4], 4294967168 }
 0x236   :  { %266 = vsyncpa [#allocation3], 1 }
 0x237   :  { %267 = vsyncpa [#allocation4], 1 }

</bundles_post_ra>
